<compile_context>
chip_gen: v6e
topology: v6e:2x2x1
jax: 0.10.0
libtpu: 0.0.40
codegen_flags: <defaults>
</compile_context>

<pallas_src>
import functools

import jax
import jax.numpy as jnp
from jax.experimental import pallas as pl
from jax.experimental.pallas import tpu as pltpu

LANE = 128
SUBLANE = 8


def _round_up(x, m):
    return ((x + m - 1) // m) * m


def _pad_to(arr, shape):
    pads = [(0, t - s) for s, t in zip(arr.shape, shape)]
    if all(p == (0, 0) for p in pads):
        return arr
    return jnp.pad(arr, pads)


# ---------------------------------------------------------------------------
# Fused kernel.
# grid = (batch b, phase p, node-row tile i)
#   p == 0 : layer 1, write h1 row tile into the per-batch VMEM scratch
#   p == 1 : layer 2 on the resident h1, running max-pool over node rows;
#            at the last row tile: classifier head -> lane-dense output slab.
# ---------------------------------------------------------------------------
def _gnn_fused_kernel(a_ref, x_ref, w1_ref, b1_ref, w2_ref, b2_ref,
                      wc_ref, bc_ref, out_ref, h1_ref, pool_ref,
                      *, tn, n_real, n_padded, a_resident):
    p = pl.program_id(1)
    i = pl.program_id(2)
    last_i = pl.num_programs(2) - 1

    # A row tile for this step: slice of the per-batch resident block, or the
    # whole (TN, Np) block in the row-tiled fallback.
    row0 = pl.multiple_of(i * tn, tn) if a_resident else 0
    a_tile = a_ref[0, pl.ds(row0, tn), :]                      # (TN, Np) bf16

    # ---------------- phase 0: layer 1 -> h1 scratch -----------------------
    @pl.when(p == 0)
    def _layer1():
        agg = jnp.dot(a_tile, x_ref[0],
                      preferred_element_type=jnp.float32)      # (TN, Dp) f32
        h1 = jnp.dot(agg, w1_ref[...],
                     preferred_element_type=jnp.float32) + b1_ref[...]
        h1_ref[pl.ds(pl.multiple_of(i * tn, tn), tn), :] = (
            jnp.maximum(h1, 0.0).astype(h1_ref.dtype))

    # -------- phase 1: layer 2 + running max-pool + classifier head --------
    @pl.when(p == 1)
    def _layer2():
        @pl.when(i == 0)
        def _():
            pool_ref[...] = jnp.full(pool_ref.shape, -jnp.inf, pool_ref.dtype)

        agg = jnp.dot(a_tile, h1_ref[...],
                      preferred_element_type=jnp.float32)      # (TN, Hp) f32
        h2 = jnp.dot(agg, w2_ref[...],
                     preferred_element_type=jnp.float32) + b2_ref[...]
        h2 = jnp.maximum(h2, 0.0)

        if n_real < n_padded:
            # mask node rows that only exist because of padding: their
            # h2 == relu(b2) could be > 0 and corrupt the max-pool.
            rows = jax.lax.broadcasted_iota(jnp.int32, (tn, 1), 0) + i * tn
            h2 = jnp.where(rows < n_real, h2, -jnp.inf)

        # per-sublane partial max (pure VPU); cross-sublane collapse deferred.
        part = jnp.max(h2.reshape(tn // SUBLANE, SUBLANE, h2.shape[-1]),
                       axis=0)                                 # (8, Hp)
        pool_ref[...] = jnp.maximum(pool_ref[...], part)

        @pl.when(i == last_i)
        def _():
            pooled = jnp.max(pool_ref[...], axis=0, keepdims=True)  # (1, Hp)
            pooled = jnp.broadcast_to(pooled, pool_ref.shape)       # (8, Hp)
            # padded rows of Wc / lanes of bc are zero -> padded output lanes
            # are exact zeros; output slab is lane-dense (no masked stores).
            logits = jnp.dot(pooled, wc_ref[...],
                             preferred_element_type=jnp.float32) + bc_ref[...]
            out_ref[0] = logits.astype(out_ref.dtype)


def gnn_forward(x, a, w1, b1, w2, b2, wc, bc):
    """x: (B, N, D) node features; a: (B, N, N) adjacency; returns (B, C)."""
    B, N, D = x.shape
    H = w1.shape[1]
    C = wc.shape[1]
    Dp, Hp, Cp = _round_up(D, LANE), _round_up(H, LANE), _round_up(C, LANE)

    # Node-row tile and padded node count (TN divides Np, both multiples of
    # 128 -> tile sizes stay bounded regardless of N).
    TN = min(512, _round_up(N, LANE))
    Np = _round_up(N, TN)

    # Zero-pad feature/hidden/class lanes (exact: padded weight rows/cols are
    # zero, ReLU(0)=0, padded node rows are masked out of the pool).
    # Streamed operands A / X go to bf16; accumulation stays f32 in-kernel.
    ap = _pad_to(a, (B, Np, Np)).astype(jnp.bfloat16)
    xp = _pad_to(x, (B, Np, Dp)).astype(jnp.bfloat16)
    w1p = _pad_to(w1, (Dp, Hp)).astype(jnp.float32)
    b1p = _pad_to(b1.reshape(1, -1), (1, Hp)).astype(jnp.float32)
    w2p = _pad_to(w2, (Hp, Hp)).astype(jnp.float32)
    b2p = _pad_to(b2.reshape(1, -1), (1, Hp)).astype(jnp.float32)
    wcp = _pad_to(wc, (Hp, Cp)).astype(jnp.float32)
    bcp = _pad_to(bc.reshape(1, -1), (1, Cp)).astype(jnp.float32)

    # Keep the whole per-batch A resident in VMEM (read A once) when its
    # double-buffered block fits a conservative budget (ok on v7x's 64 MiB);
    # otherwise fall back to row-tiled A (read twice, bounded VMEM).
    a_resident = (2 * Np * Np * 2) <= (24 << 20)
    if a_resident:
        a_spec = pl.BlockSpec((1, Np, Np), lambda b, p, i: (b, 0, 0))
    else:
        a_spec = pl.BlockSpec((1, TN, Np), lambda b, p, i: (b, i, 0))

    grid = (B, 2, Np // TN)

    weight_bytes = (Dp * Hp + Hp + Hp * Hp + Hp + Hp * Cp + Cp) * 4
    a_reads = 1 if a_resident else 2
    cost = pl.CostEstimate(
        flops=int(B * (2 * Np * Np * Dp + 2 * Np * Dp * Hp
                       + 2 * Np * Np * Hp + 2 * Np * Hp * Hp
                       + 2 * SUBLANE * Hp * Cp)),
        transcendentals=0,
        bytes_accessed=int(B * Np * Np * 2 * a_reads      # A (bf16)
                           + B * Np * Dp * 2              # X (bf16)
                           + weight_bytes                 # weights / biases
                           + B * SUBLANE * Cp * 4))       # output slab

    # VMEM budget: double-buffered blocks + persistent scratch.
    vmem_bytes = (2 * (Np * Np if a_resident else TN * Np) * 2  # A
                  + 2 * Np * Dp * 2                             # X
                  + 2 * weight_bytes                            # W / b
                  + 2 * SUBLANE * Cp * 4                        # out
                  + Np * Hp * 2 + SUBLANE * Hp * 4)             # h1 + pool
    vmem_limit = None
    if vmem_bytes > (12 << 20):
        vmem_limit = min(int(vmem_bytes * 3 // 2) + (2 << 20), 64 << 20)

    kernel = functools.partial(_gnn_fused_kernel, tn=TN, n_real=N,
                               n_padded=Np, a_resident=a_resident)

    out_padded = pl.pallas_call(
        kernel,
        out_shape=jax.ShapeDtypeStruct((B, SUBLANE, Cp), jnp.float32),
        grid_spec=pltpu.PrefetchScalarGridSpec(
            num_scalar_prefetch=0,
            grid=grid,
            in_specs=[
                a_spec,                                                # A
                pl.BlockSpec((1, Np, Dp), lambda b, p, i: (b, 0, 0)),  # X
                pl.BlockSpec((Dp, Hp), lambda b, p, i: (0, 0)),        # W1
                pl.BlockSpec((1, Hp), lambda b, p, i: (0, 0)),         # b1
                pl.BlockSpec((Hp, Hp), lambda b, p, i: (0, 0)),        # W2
                pl.BlockSpec((1, Hp), lambda b, p, i: (0, 0)),         # b2
                pl.BlockSpec((Hp, Cp), lambda b, p, i: (0, 0)),        # Wc
                pl.BlockSpec((1, Cp), lambda b, p, i: (0, 0)),         # bc
            ],
            out_specs=pl.BlockSpec((1, SUBLANE, Cp),
                                   lambda b, p, i: (b, 0, 0)),
            scratch_shapes=[
                pltpu.VMEM((Np, Hp), jnp.bfloat16),    # h1 (resident / batch)
                pltpu.VMEM((SUBLANE, Hp), jnp.float32),  # running max-pool
            ],
        ),
        compiler_params=pltpu.CompilerParams(
            dimension_semantics=("parallel", "arbitrary", "arbitrary"),
            vmem_limit_bytes=vmem_limit),
        cost_estimate=cost,
    )(ap, xp, w1p, b1p, w2p, b2p, wcp, bcp)

    # lane-dense padded output slab -> (B, num_classes)
    return out_padded[:, 0, :C]


def gnn_reference(x, a, w1, b1, w2, b2, wc, bc):
    """Pure-JAX (f32) reference of the same forward, for a correctness check."""
    h1 = jnp.maximum(jnp.einsum('bnm,bmd->bnd', a, x) @ w1 + b1[None], 0.0)
    h2 = jnp.maximum(jnp.einsum('bnm,bmh->bnh', a, h1) @ w2 + b2[None], 0.0)
    pooled = jnp.max(h2, axis=1)
    return pooled @ wc + bc


if __name__ == "__main__":
    key = jax.random.PRNGKey(0)
    # bs, num nodes, feature_dim, hidden, num_classes (stage='det')
    B, N, D, H, C = 2, 16, 8, 32, 1
    k = jax.random.split(key, 8)

    x = jax.random.normal(k[0], (B, N, D), jnp.float32)

    # row-normalized symmetric adjacency with self loops (typical data[1])
    a_raw = (jax.random.uniform(k[1], (B, N, N)) > 0.7).astype(jnp.float32)
    a_sym = jnp.maximum(a_raw, jnp.swapaxes(a_raw, 1, 2)) + jnp.eye(N)[None]
    a = a_sym / jnp.sum(a_sym, axis=2, keepdims=True)

    s1 = 1.0 / jnp.sqrt(D)
    s2 = 1.0 / jnp.sqrt(H)
    w1 = jax.random.uniform(k[2], (D, H), jnp.float32, -s1, s1)
    b1 = jax.random.uniform(k[3], (1, H), jnp.float32, -s1, s1)
    w2 = jax.random.uniform(k[4], (H, H), jnp.float32, -s2, s2)
    b2 = jax.random.uniform(k[5], (1, H), jnp.float32, -s2, s2)
    wc = jax.random.uniform(k[6], (H, C), jnp.float32, -s2, s2)
    bc = jax.random.uniform(k[7], (1, C), jnp.float32, -s2, s2)

    out = gnn_forward(x, a, w1, b1, w2, b2, wc, bc)
    jax.block_until_ready(out)

    ref = gnn_reference(x, a, w1, b1, w2, b2, wc, bc)
    assert out.shape == (B, C), out.shape
    # bf16 inputs (f32 accumulation) -> relaxed tolerance vs. the f32 reference
    assert jnp.allclose(out, ref, atol=5e-2, rtol=5e-2), (out, ref)
    print("KERNEL_OK")
</pallas_src>

<mosaic_0001>
module attributes {stable_mosaic.version = 11 : i64} {
  func.func @_gnn_fused_kernel(%arg0: i32, %arg1: i32, %arg2: i32, %arg3: memref<1x128x128xbf16, #tpu.memory_space<vmem>>, %arg4: memref<1x128x128xbf16, #tpu.memory_space<vmem>>, %arg5: memref<128x128xf32, #tpu.memory_space<vmem>>, %arg6: memref<1x128xf32, #tpu.memory_space<vmem>>, %arg7: memref<128x128xf32, #tpu.memory_space<vmem>>, %arg8: memref<1x128xf32, #tpu.memory_space<vmem>>, %arg9: memref<128x128xf32, #tpu.memory_space<vmem>>, %arg10: memref<1x128xf32, #tpu.memory_space<vmem>>, %arg11: memref<1x8x128xf32, #tpu.memory_space<vmem>>, %arg12: memref<128x128xbf16, #tpu.memory_space<vmem>>, %arg13: memref<8x128xf32, #tpu.memory_space<vmem>>) attributes {dimension_semantics = [#tpu.dimension_semantics<parallel>, #tpu.dimension_semantics<arbitrary>, #tpu.dimension_semantics<arbitrary>], iteration_bounds = array<i64: 2, 2, 1>, scalar_prefetch = 0 : i64, scratch_operands = 2 : i64, tpu.core_type = #tpu.core_type<tc>, window_params = [{transform_indices = @transform_0, window_bounds = array<i64: 1, 128, 128>}, {transform_indices = @transform_1, window_bounds = array<i64: 1, 128, 128>}, {pipeline_mode = #tpu.pipeline_mode<synchronous>, transform_indices = @transform_2, window_bounds = array<i64: 128, 128>}, {pipeline_mode = #tpu.pipeline_mode<synchronous>, transform_indices = @transform_3, window_bounds = array<i64: 1, 128>}, {pipeline_mode = #tpu.pipeline_mode<synchronous>, transform_indices = @transform_4, window_bounds = array<i64: 128, 128>}, {pipeline_mode = #tpu.pipeline_mode<synchronous>, transform_indices = @transform_5, window_bounds = array<i64: 1, 128>}, {pipeline_mode = #tpu.pipeline_mode<synchronous>, transform_indices = @transform_6, window_bounds = array<i64: 128, 128>}, {pipeline_mode = #tpu.pipeline_mode<synchronous>, transform_indices = @transform_7, window_bounds = array<i64: 1, 128>}, {transform_indices = @transform_8, window_bounds = array<i64: 1, 8, 128>}]} {
    %c128_i32 = arith.constant 128 : i32
    %0 = arith.muli %arg2, %c128_i32 : i32
    %1 = tpu.assume_multiple %0, 128 : i32
    %c0 = arith.constant 0 : index
    %2 = arith.index_cast %1 : i32 to index
    %c0_0 = arith.constant 0 : index
    %3 = vector.load %arg3[%c0, %2, %c0_0] : memref<1x128x128xbf16, #tpu.memory_space<vmem>>, vector<1x128x128xbf16>
    %4 = vector.shape_cast %3 : vector<1x128x128xbf16> to vector<128x128xbf16>
    %c0_i32 = arith.constant 0 : i32
    %5 = arith.cmpi eq, %arg1, %c0_i32 : i32
    %6 = arith.extui %5 : i1 to i32
    %c0_i32_1 = arith.constant 0 : i32
    %7 = arith.cmpi ne, %6, %c0_i32_1 : i32
    scf.if %7 {
      %c0_3 = arith.constant 0 : index
      %c0_4 = arith.constant 0 : index
      %c0_5 = arith.constant 0 : index
      %11 = vector.load %arg4[%c0_3, %c0_4, %c0_5] : memref<1x128x128xbf16, #tpu.memory_space<vmem>>, vector<1x128x128xbf16>
      %12 = vector.shape_cast %11 : vector<1x128x128xbf16> to vector<128x128xbf16>
      %cst = arith.constant dense<0.000000e+00> : vector<128x128xf32>
      %13 = tpu.matmul %4, %12, %cst {dimension_numbers = #tpu.dot_dimension_numbers<[1], [0], [0], [1], [0, 0, 1, 1], [], []>} : vector<128x128xbf16>, vector<128x128xbf16>, vector<128x128xf32> -> vector<128x128xf32>
      %c0_6 = arith.constant 0 : index
      %c0_7 = arith.constant 0 : index
      %14 = vector.load %arg5[%c0_6, %c0_7] : memref<128x128xf32, #tpu.memory_space<vmem>>, vector<128x128xf32>
      %cst_8 = arith.constant dense<0.000000e+00> : vector<128x128xf32>
      %15 = tpu.matmul %13, %14, %cst_8 {dimension_numbers = #tpu.dot_dimension_numbers<[1], [0], [0], [1], [0, 0, 1, 1], [], []>} : vector<128x128xf32>, vector<128x128xf32>, vector<128x128xf32> -> vector<128x128xf32>
      %c0_9 = arith.constant 0 : index
      %c0_10 = arith.constant 0 : index
      %16 = vector.load %arg6[%c0_9, %c0_10] : memref<1x128xf32, #tpu.memory_space<vmem>>, vector<1x128xf32>
      %17 = vector.broadcast %16 : vector<1x128xf32> to vector<128x128xf32>
      %18 = arith.addf %15, %17 : vector<128x128xf32>
      %cst_11 = arith.constant 0.000000e+00 : f32
      %19 = vector.broadcast %cst_11 : f32 to vector<128x128xf32>
      %20 = arith.maximumf %18, %19 : vector<128x128xf32>
      %21 = arith.truncf %20 : vector<128x128xf32> to vector<128x128xbf16>
      %c128_i32_12 = arith.constant 128 : i32
      %22 = arith.muli %arg2, %c128_i32_12 : i32
      %23 = tpu.assume_multiple %22, 128 : i32
      %24 = arith.index_cast %23 : i32 to index
      %c0_13 = arith.constant 0 : index
      %25 = vector.load %arg12[%24, %c0_13] : memref<128x128xbf16, #tpu.memory_space<vmem>>, vector<128x128xbf16>
      tpu.vector_store %arg12[%24, %c0_13], %21 {strides = array<i32>} : memref<128x128xbf16, #tpu.memory_space<vmem>>, vector<128x128xbf16>,
    } else {
    }
    %c1_i32 = arith.constant 1 : i32
    %8 = arith.cmpi eq, %arg1, %c1_i32 : i32
    %9 = arith.extui %8 : i1 to i32
    %c0_i32_2 = arith.constant 0 : i32
    %10 = arith.cmpi ne, %9, %c0_i32_2 : i32
    scf.if %10 {
      %c0_i32_3 = arith.constant 0 : i32
      %11 = arith.cmpi eq, %arg2, %c0_i32_3 : i32
      %12 = arith.extui %11 : i1 to i32
      %c0_i32_4 = arith.constant 0 : i32
      %13 = arith.cmpi ne, %12, %c0_i32_4 : i32
      scf.if %13 {
        %cst_22 = arith.constant 0xFF800000 : f32
        %41 = vector.broadcast %cst_22 : f32 to vector<8x128xf32>
        %c0_23 = arith.constant 0 : index
        %c0_24 = arith.constant 0 : index
        %42 = vector.load %arg13[%c0_23, %c0_24] : memref<8x128xf32, #tpu.memory_space<vmem>>, vector<8x128xf32>
        tpu.vector_store %arg13[%c0_23, %c0_24], %41 {strides = array<i32>} : memref<8x128xf32, #tpu.memory_space<vmem>>, vector<8x128xf32>,
      } else {
      }
      %c0_5 = arith.constant 0 : index
      %c0_6 = arith.constant 0 : index
      %14 = vector.load %arg12[%c0_5, %c0_6] : memref<128x128xbf16, #tpu.memory_space<vmem>>, vector<128x128xbf16>
      %cst = arith.constant dense<0.000000e+00> : vector<128x128xf32>
      %15 = tpu.matmul %4, %14, %cst {dimension_numbers = #tpu.dot_dimension_numbers<[1], [0], [0], [1], [0, 0, 1, 1], [], []>} : vector<128x128xbf16>, vector<128x128xbf16>, vector<128x128xf32> -> vector<128x128xf32>
      %c0_7 = arith.constant 0 : index
      %c0_8 = arith.constant 0 : index
      %16 = vector.load %arg7[%c0_7, %c0_8] : memref<128x128xf32, #tpu.memory_space<vmem>>, vector<128x128xf32>
      %cst_9 = arith.constant dense<0.000000e+00> : vector<128x128xf32>
      %17 = tpu.matmul %15, %16, %cst_9 {dimension_numbers = #tpu.dot_dimension_numbers<[1], [0], [0], [1], [0, 0, 1, 1], [], []>} : vector<128x128xf32>, vector<128x128xf32>, vector<128x128xf32> -> vector<128x128xf32>
      %c0_10 = arith.constant 0 : index
      %c0_11 = arith.constant 0 : index
      %18 = vector.load %arg8[%c0_10, %c0_11] : memref<1x128xf32, #tpu.memory_space<vmem>>, vector<1x128xf32>
      %19 = vector.broadcast %18 : vector<1x128xf32> to vector<128x128xf32>
      %20 = arith.addf %17, %19 : vector<128x128xf32>
      %cst_12 = arith.constant 0.000000e+00 : f32
      %21 = vector.broadcast %cst_12 : f32 to vector<128x128xf32>
      %22 = arith.maximumf %20, %21 : vector<128x128xf32>
      %23 = tpu.iota {dimensions = array<i32: 0>} : vector<128x1xi32>
      %c128_i32_13 = arith.constant 128 : i32
      %24 = arith.muli %arg2, %c128_i32_13 : i32
      %25 = vector.broadcast %24 : i32 to vector<128x1xi32>
      %26 = arith.addi %23, %25 : vector<128x1xi32>
      %c16_i32 = arith.constant 16 : i32
      %27 = vector.broadcast %c16_i32 : i32 to vector<128x1xi32>
      %28 = arith.cmpi slt, %26, %27 : vector<128x1xi32>
      %cst_14 = arith.constant 0xFF800000 : f32
      %29 = vector.shape_cast %28 : vector<128x1xi1> to vector<128x1xi1>
      %30 = vector.broadcast %29 : vector<128x1xi1> to vector<128x128xi1>
      %31 = vector.broadcast %cst_14 : f32 to vector<128x128xf32>
      %32 = arith.select %30, %22, %31 : vector<128x128xi1>, vector<128x128xf32>
      %33 = vector.shape_cast %32 : vector<128x128xf32> to vector<16x8x128xf32>
      %cst_15 = arith.constant dense<0xFF800000> : vector<8x128xf32>
      %34 = vector.multi_reduction <maximumf>, %33, %cst_15 [0] : vector<16x8x128xf32> to vector<8x128xf32>
      %c0_16 = arith.constant 0 : index
      %c0_17 = arith.constant 0 : index
      %35 = vector.load %arg13[%c0_16, %c0_17] : memref<8x128xf32, #tpu.memory_space<vmem>>, vector<8x128xf32>
      %36 = arith.maximumf %35, %34 : vector<8x128xf32>
      %c0_18 = arith.constant 0 : index
      %c0_19 = arith.constant 0 : index
      %37 = vector.load %arg13[%c0_18, %c0_19] : memref<8x128xf32, #tpu.memory_space<vmem>>, vector<8x128xf32>
      tpu.vector_store %arg13[%c0_18, %c0_19], %36 {strides = array<i32>} : memref<8x128xf32, #tpu.memory_space<vmem>>, vector<8x128xf32>,
      %c0_i32_20 = arith.constant 0 : i32
      %38 = arith.cmpi eq, %arg2, %c0_i32_20 : i32
      %39 = arith.extui %38 : i1 to i32
      %c0_i32_21 = arith.constant 0 : i32
      %40 = arith.cmpi ne, %39, %c0_i32_21 : i32
      scf.if %40 {
        %c0_22 = arith.constant 0 : index
        %c0_23 = arith.constant 0 : index
        %41 = vector.load %arg13[%c0_22, %c0_23] : memref<8x128xf32, #tpu.memory_space<vmem>>, vector<8x128xf32>
        %cst_24 = arith.constant dense<0xFF800000> : vector<128xf32>
        %42 = vector.multi_reduction <maximumf>, %41, %cst_24 [0] : vector<8x128xf32> to vector<128xf32>
        %43 = vector.shape_cast %42 : vector<128xf32> to vector<1x128xf32>
        %44 = vector.shape_cast %43 : vector<1x128xf32> to vector<1x128xf32>
        %45 = vector.broadcast %44 : vector<1x128xf32> to vector<8x128xf32>
        %c0_25 = arith.constant 0 : index
        %c0_26 = arith.constant 0 : index
        %46 = vector.load %arg9[%c0_25, %c0_26] : memref<128x128xf32, #tpu.memory_space<vmem>>, vector<128x128xf32>
        %cst_27 = arith.constant dense<0.000000e+00> : vector<8x128xf32>
        %47 = tpu.matmul %45, %46, %cst_27 {dimension_numbers = #tpu.dot_dimension_numbers<[1], [0], [0], [1], [0, 0, 1, 1], [], []>} : vector<8x128xf32>, vector<128x128xf32>, vector<8x128xf32> -> vector<8x128xf32>
        %c0_28 = arith.constant 0 : index
        %c0_29 = arith.constant 0 : index
        %48 = vector.load %arg10[%c0_28, %c0_29] : memref<1x128xf32, #tpu.memory_space<vmem>>, vector<1x128xf32>
        %49 = vector.broadcast %48 : vector<1x128xf32> to vector<8x128xf32>
        %50 = arith.addf %47, %49 : vector<8x128xf32>
        %c0_30 = arith.constant 0 : index
        %c0_31 = arith.constant 0 : index
        %c0_32 = arith.constant 0 : index
        %51 = vector.load %arg11[%c0_30, %c0_31, %c0_32] : memref<1x8x128xf32, #tpu.memory_space<vmem>>, vector<1x8x128xf32>
        %52 = vector.shape_cast %51 : vector<1x8x128xf32> to vector<8x128xf32>
        %53 = vector.shape_cast %50 : vector<8x128xf32> to vector<1x8x128xf32>
        tpu.vector_store %arg11[%c0_30, %c0_31, %c0_32], %53 {strides = array<i32>} : memref<1x8x128xf32, #tpu.memory_space<vmem>>, vector<1x8x128xf32>,
      } else {
      }
    } else {
    }
    return
  }
  func.func @transform_0(%arg0: i32, %arg1: i32, %arg2: i32) -> (i32, i32, i32) {
    %c0_i32 = arith.constant 0 : i32
    %c0_i32_0 = arith.constant 0 : i32
    %c0_i32_1 = arith.constant 0 : i32
    return %arg0, %c0_i32, %c0_i32_0 : i32, i32, i32
  }
  func.func @transform_1(%arg0: i32, %arg1: i32, %arg2: i32) -> (i32, i32, i32) {
    %c0_i32 = arith.constant 0 : i32
    %c0_i32_0 = arith.constant 0 : i32
    %c0_i32_1 = arith.constant 0 : i32
    return %arg0, %c0_i32, %c0_i32_0 : i32, i32, i32
  }
  func.func @transform_2(%arg0: i32, %arg1: i32, %arg2: i32) -> (i32, i32) {
    %c0_i32 = arith.constant 0 : i32
    %c0_i32_0 = arith.constant 0 : i32
    %c0_i32_1 = arith.constant 0 : i32
    return %c0_i32, %c0_i32_0 : i32, i32
  }
  func.func @transform_3(%arg0: i32, %arg1: i32, %arg2: i32) -> (i32, i32) {
    %c0_i32 = arith.constant 0 : i32
    %c0_i32_0 = arith.constant 0 : i32
    %c0_i32_1 = arith.constant 0 : i32
    return %c0_i32, %c0_i32_0 : i32, i32
  }
  func.func @transform_4(%arg0: i32, %arg1: i32, %arg2: i32) -> (i32, i32) {
    %c0_i32 = arith.constant 0 : i32
    %c0_i32_0 = arith.constant 0 : i32
    %c0_i32_1 = arith.constant 0 : i32
    return %c0_i32, %c0_i32_0 : i32, i32
  }
  func.func @transform_5(%arg0: i32, %arg1: i32, %arg2: i32) -> (i32, i32) {
    %c0_i32 = arith.constant 0 : i32
    %c0_i32_0 = arith.constant 0 : i32
    %c0_i32_1 = arith.constant 0 : i32
    return %c0_i32, %c0_i32_0 : i32, i32
  }
  func.func @transform_6(%arg0: i32, %arg1: i32, %arg2: i32) -> (i32, i32) {
    %c0_i32 = arith.constant 0 : i32
    %c0_i32_0 = arith.constant 0 : i32
    %c0_i32_1 = arith.constant 0 : i32
    return %c0_i32, %c0_i32_0 : i32, i32
  }
  func.func @transform_7(%arg0: i32, %arg1: i32, %arg2: i32) -> (i32, i32) {
    %c0_i32 = arith.constant 0 : i32
    %c0_i32_0 = arith.constant 0 : i32
    %c0_i32_1 = arith.constant 0 : i32
    return %c0_i32, %c0_i32_0 : i32, i32
  }
  func.func @transform_8(%arg0: i32, %arg1: i32, %arg2: i32) -> (i32, i32, i32) {
    %c0_i32 = arith.constant 0 : i32
    %c0_i32_0 = arith.constant 0 : i32
    %c0_i32_1 = arith.constant 0 : i32
    return %arg0, %c0_i32, %c0_i32_0 : i32, i32, i32
  }
}

</mosaic_0001>

<bundles_post_ra>
// kernel: tpu_custom_call.1
= control target key start
LH: loop header
LB: loop body
LE: loop exit
PB: predicated region body
PF: predicated region fallthrough
CT: control target
= control target key end

     0   :  { %s2937_s0 = inlined_call_operand.hbm [shape: bf16[2,128,128], index: 0, kind: input, shape index: {}]   ;;  %s2938_s1 = inlined_call_operand.hbm [shape: bf16[2,128,128], index: 1, kind: input, shape index: {}]   ;;  %s2939_s2 = inlined_call_operand.hbm [shape: f32[128,128], index: 2, kind: input, shape index: {}]   ;;  %s2940_s3 = inlined_call_operand.vmem [shape: f32[1,128], index: 3, kind: input, shape index: {}]   ;;  %s2941_s4 = inlined_call_operand.hbm [shape: f32[128,128], index: 4, kind: input, shape index: {}]   ;;  %s2942_s5 = inlined_call_operand.vmem [shape: f32[1,128], index: 5, kind: input, shape index: {}]   ;;  %s2943_s6 = inlined_call_operand.hbm [shape: f32[128,128], index: 6, kind: input, shape index: {}]   ;;  %s2944_s7 = inlined_call_operand.vmem [shape: f32[1,128], index: 7, kind: input, shape index: {}]   ;;  %s2945_s8 = inlined_call_operand.hbm [shape: f32[2,8,128], index: 8, kind: output, shape index: {}]  }
   0x1   :  { %2954 = sst [smem:[#allocation26_spill]] %s2937_s0 }
   0x2   :  { %2955 = sst [smem:[#allocation27_spill]] %s2939_s2 }
   0x3   :  { %2956 = sst [smem:[#allocation28_spill]] %s2941_s4 }
   0x4   :  { %2957 = sst [smem:[#allocation29_spill]] %s2943_s6 }
   0x5   :  { %2958 = sst [smem:[#allocation30_spill]] %s2945_s8 }
   0x6   :  { %13 = vsyncpa [#allocation5], 0 }
   0x7   :  { %15 = vsyncpa [#allocation5 + $0x1], 0 }
   0x8   :  { %16 = vsyncpa [#allocation8], 0 }
   0x9   :  { %18 = vsyncpa [#allocation8 + $0x1], 0 }
   0xa   :  { %19 = vsyncpa [#allocation11], 0 }
   0xb   :  { %20 = vsyncpa [#allocation6], 0 }
   0xc   :  { %22 = vsyncpa [#allocation6 + $0x1], 0  ;;  %s2605_s27 = smov 0   ;;  %s2607_s28 = smov 0  }
   0xd   :  { %s2609_s29 = smov 0   ;;  %s2611_s30 = smov 0  }
   0xe   :  { %s2613_s9 = smov 0   ;;  %s2615_s10 = smov 0  }
   0xf   :  { %s2617_s11 = smov 0   ;;  %s2619_s12 = smov 0  }
  0x10 LB: > { %2959 = sst [smem:[#allocation19_spill]] %s2518_s27  ;;  %s2646_s13 = sadd.s32 4294967295, %s2546_s12   ;;  %s2546_s12 = sphi %s2619_s12, %s28_s12   ;;  %s2542_s11 = sphi %s2617_s11, %s2994_s11   ;;  %s2538_s10 = sphi %s2615_s10, %s2989_s10   ;;  %s2534_s9 = sphi %s2613_s9, %s2993_s9   ;;  %s2530_s30 = sphi %s2611_s30, %s2988_s30   ;;  %s2526_s29 = sphi %s2609_s29, %s2987_s29   ;;  %s2522_s28 = sphi %s2607_s28, %s2992_s28   ;;  %s2518_s27 = sphi %s2605_s27, %s2991_s27  }
  0x11   : > { %2960 = sst [smem:[#allocation20_spill]] %s2526_s29  ;;  %s1703_s14 = sadd.s32 4294967294, %s2546_s12  }
  0x12   : > { %2961 = sst [smem:[#allocation21_spill]] %s2538_s10  ;;  %p67_p0 = scmp.ne.s32.totalorder %s2522_s28, %s2518_s27 }
  0x13   : > { %p2946_p1 = scmp.eq.s32.totalorder %s2646_s13, 0  ;;  %p249_p3 = scmp.eq.s32.totalorder %s1703_s14, 3 }
  0x14   : > { %p1704_p5 = scmp.ge.s32.totalorder %s2546_s12, 1  ;;  %p256_p7 = scmp.lt.s32.totalorder %s2546_s12, 5 }
  0x15   : > { %p2655_p4 = por %p2946_p1, %p67_p0  ;;  %p2660_p6 = por %p249_p3, %p67_p0 }
  0x16   : > { %p2665_p8 = pnand %p1704_p5, %p256_p7  ;;  %s2548_s18 = smov [#allocation9]  }
  0x17   : > { %s2962_s15 = scalar_select %p2655_p4, 1, 0 }
  0x18   : > { %s2963_s16 = scalar_select %p2660_p6, 1, 0 }
  0x19   : > { %s268_s19 = sshll.u32 %s2548_s18, 4  ;;  %p2186_p9 = pneg %p2665_p8  ;;  %s269_s19 = int_to_ptr.vmem [resolvable:$true] %s268_s19 }
  0x1a   : > { %2964 = sst [smem:[#allocation22_spill]] %s2963_s16  ;;  %s2549_s21 = smov [#allocation10]  }
  0x1b   : > { %p2673_p10 = pnand %p2186_p9, %p2946_p1  ;;  %s284_s22 = sshll.u32 %s2549_s21, 4  ;;  %s285_s22 = int_to_ptr.vmem [resolvable:$true] %s284_s22 }
  0x1c   : > { %s2550_s23 = smov [#allocation12]   ;;  %s2315_s25 = scalar_lea.vmem %s269_s19, 2048 }
  0x1d   : > { %s300_s24 = sshll.u32 %s2550_s23, 4  ;;  %p2306_p11 = pneg %p2673_p10  ;;  %s301_s24 = int_to_ptr.vmem [resolvable:$true] %s300_s24 }
  0x1e   : > { %p2316_p12 = scmp.ne.s32.totalorder %s269_s19, %s2315_s25  ;;  %p2323_p3 = scmp.lt.s32.totalorder %s269_s19, %s269_s19 }
  0x1f   : > { %p2324_p5 = scmp.lt.s32.totalorder %s2315_s25, %s2315_s25 }
  0x20   : > { %p2318_p13 = pnand %p2316_p12, %p2306_p11 }
  0x21   : > { %p2325_p7 = por %p2324_p5, %p2323_p3 }
  0x22   : > { %p2319_p0 = pneg %p2318_p13 }
  0x24   : > { %p2326_p9 = pnand %p2325_p7, %p2319_p0 }
  0x26   : > { %2329 = shalt.err (!%p2326_p9)
}
  0x27   : > { %s2551_s26 = smov 128   ;;  %s2552_s14 = smov 8  }
  0x28   : > { %s2967_s2 = sld [smem:[#allocation27_spill]]  ;;  %s2341_s23 = scalar_lea.vmem %s285_s22, 2048 }
  0x29   : > { %p2342_p1 = scmp.ne.s32.totalorder %s285_s22, %s2341_s23  ;;  %p2349_p2 = scmp.lt.s32.totalorder %s285_s22, %s285_s22 }
  0x2a   : > { %p2350_p6 = scmp.lt.s32.totalorder %s2341_s23, %s2341_s23 }
  0x2b   : > { %p2344_p12 = pnand %p2342_p1, %p2306_p11 }
  0x2c   : > { %p2351_p3 = por %p2350_p6, %p2349_p2 }
  0x2d   : > { %p2345_p13 = pneg %p2344_p12 }
  0x2e   : > { %2189 = dma.hbm_to_vmem [thread:$0]  (!%p2673_p10), %s2967_s2, 2048, %s269_s19, [#allocation8], %s2551_s26, %s2551_s26, %s2552_s14  }
  0x2f   : > { %p2352_p0 = pnand %p2351_p3, %p2345_p13 }
  0x31   : > { %2355 = shalt.err (!%p2352_p0)
}
  0x32   : > { %s2968_s4 = sld [smem:[#allocation28_spill]]  ;;  %s2367_s19 = scalar_lea.vmem %s301_s24, 2048 }
  0x33   : > { %p2368_p5 = scmp.ne.s32.totalorder %s301_s24, %s2367_s19  ;;  %p2375_p9 = scmp.lt.s32.totalorder %s301_s24, %s301_s24 }
  0x34   : > { %p2376_p12 = scmp.lt.s32.totalorder %s2367_s19, %s2367_s19 }
  0x35   : > { %p2370_p7 = pnand %p2368_p5, %p2306_p11 }
  0x36   : > { %p2377_p4 = por %p2376_p12, %p2375_p9 }
  0x37   : > { %p2371_p1 = pneg %p2370_p7 }
  0x38   : > { %2192 = dma.hbm_to_vmem [thread:$0]  (!%p2673_p10), %s2968_s4, 2048, %s285_s22, [#allocation11], %s2551_s26, %s2551_s26, %s2552_s14  }
  0x39   : > { %p2378_p2 = pnand %p2377_p4, %p2371_p1 }
  0x3b   : > { %2381 = shalt.err (!%p2378_p2)
}
  0x3c   : > { %s2969_s6 = sld [smem:[#allocation29_spill]]  ;;  %s43_s16 = sadd.s32 1, %s2538_s10 }
  0x3d   : > { %p45_p4 = scmp.ge.s32.totalorder %s43_s16, 2  ;;  %s47_s22 = sadd.s32 1, %s2542_s11 }
  0x3e   : > { %s54_s20 = sadd.s32 1, %s2526_s29  ;;  %p61_p6 = scmp.ne.s32.totalorder %s2526_s29, %s2522_s28 }
  0x3f   : > { %s2996_s16 = smov (%p45_p4, %s43_s16), 0  ;;  %s2998_s22 = smov (!%p45_p4, %s47_s22), %s2542_s11 }
  0x40   : > { %2970 = sst [smem:[#allocation23_spill]] %s2996_s16  ;;  %p62_p11 = scmp.eq.s32.totalorder %s2546_s12, 0 }
  0x41   : > { %p2971_p13 = scmp.eq.s32.totalorder %s2646_s13, 3  ;;  %p2210_p0 = scmp.lt.s32.totalorder %s2546_s12, 4 }
  0x42   : > { %2195 = dma.hbm_to_vmem [thread:$0]  (!%p2673_p10), %s2969_s6, 2048, %s301_s24, [#allocation11], %s2551_s26, %s2551_s26, %s2552_s14  }
  0x43   : > { %p2714_p3 = por %p2971_p13, %p61_p6  ;;  %p49_p10 = scmp.ge.s32.totalorder %s2998_s22, 2 }
  0x44   : > { %p63_p5 = por %p62_p11, %p61_p6  ;;  %s317_s24 = sand.u32 1, %s2526_s29  }
  0x45   : > { %s3000_s22 = smov (%p49_p10, %s2998_s22), 0  ;;  %s2722_s26 = sshll.u32 %s317_s24, 6 }
  0x46   : > { %2973 = sst [smem:[#allocation24_spill]] %s3000_s22  ;;  %s51_s14 = ssub.s32 %s2542_s11, %s3000_s22 }
  0x47   : > { %p52_p7 = scmp.eq.s32.totalorder %s51_s14, 0  ;;  %s1779_s25 = sshll.u32 %s2542_s11, 10 }
  0x48   : > { %s2974_s0 = sld [smem:[#allocation26_spill]]  ;;  %s321_s2 = scalar_lea.vmem [#allocation4], %s2722_s26 }
  0x49   : > { %s328_s4 = sshll.u32 %s321_s2, 4  ;;  %p2738_p1 = pnand %p2210_p0, %p63_p5  ;;  %s329_s4 = int_to_ptr.vmem [resolvable:$true] %s328_s4 }
  0x4a   : > { %s2734_s6 = scalar_select %p52_p7, %s2526_s29, %s54_s20  }
  0x4b   : > { %s318_s22 = scalar_lea.sflag [#allocation5], %s317_s24  ;;  %p2384_p9 = pneg %p2738_p1 }
  0x4c   : > { %2975 = sst [smem:[#allocation25_spill]] %s2734_s6  ;;  %s2395_s14 = scalar_lea.vmem %s329_s4, 1024 }
  0x4d   : > { %p2396_p12 = scmp.ne.s32.totalorder %s329_s4, %s2395_s14  ;;  %s2553_s2 = smov [#allocation4]  }
  0x4e   : > { %s327_s21 = scalar_lea.hbm %s2974_s0, %s1779_s25  ;;  %s2400_s20 = sshll.u32 %s2553_s2, 4  ;;  %s2401_s20 = int_to_ptr.vmem [resolvable:$false] %s2400_s20 }
  0x4f   : > { %p2398_p2 = pnand %p2396_p12, %p2384_p9  ;;  %s2402_s19 = scalar_lea.vmem %s2401_s20, 2048 }
  0x50   : > { %p2403_p6 = scmp.lt.s32.totalorder %s329_s4, %s2401_s20  ;;  %p2404_p11 = scmp.lt.s32.totalorder %s2402_s19, %s2395_s14 }
  0x51   : > { %p2399_p4 = pneg %p2398_p2 }
  0x52   : > { %p2405_p13 = por %p2404_p11, %p2403_p6 }
  0x54   : > { %p2406_p10 = pnand %p2405_p13, %p2399_p4 }
  0x56   : > { %2409 = shalt.err (!%p2406_p10)
}
  0x57   : > { %s2554_s18 = smov 64   ;;  %s2555_s24 = smov 4  }
  0x58   : > { %2199 = dma.hbm_to_vmem [thread:$0]  (!%p2738_p1), %s327_s21, 1024, %s329_s4, %s318_s22, %s2554_s18, %s2554_s18, %s2555_s24  }
  0x59   : > { %s348_s2 = scalar_lea.hbm %s2938_s1, %s1779_s25  ;;  %s342_s6 = scalar_lea.vmem [#allocation7], %s2722_s26 }
  0x5a   : > { %s349_s20 = sshll.u32 %s342_s6, 4  ;;  %s338_s14 = sand.u32 1, %s2546_s12   ;;  %s350_s20 = int_to_ptr.vmem [resolvable:$true] %s349_s20 }
  0x5b   : > { %s339_s19 = scalar_lea.sflag [#allocation8], %s338_s14  ;;  %s2423_s29 = scalar_lea.vmem %s350_s20, 1024 }
  0x5c   : > { %p2424_p0 = scmp.ne.s32.totalorder %s350_s20, %s2423_s29  ;;  %s2556_s27 = smov [#allocation7]  }
  0x5d   : > { %s2428_s8 = sshll.u32 %s2556_s27, 4  ;;  %s2429_s8 = int_to_ptr.vmem [resolvable:$false] %s2428_s8 }
  0x5e   : > { %p2426_p5 = pnand %p2424_p0, %p2384_p9  ;;  %s2430_s4 = scalar_lea.vmem %s2429_s8, 2048 }
  0x5f   : > { %p2431_p12 = scmp.lt.s32.totalorder %s350_s20, %s2429_s8  ;;  %p2432_p2 = scmp.lt.s32.totalorder %s2430_s4, %s2423_s29 }
  0x60   : > { %p2427_p7 = pneg %p2426_p5 }
  0x61   : > { %p2433_p4 = por %p2432_p2, %p2431_p12 }
  0x63   : > { %p2434_p6 = pnand %p2433_p4, %p2427_p7 }
  0x65   : > { %2437 = shalt.err (!%p2434_p6)
}
  0x66   : > { %2202 = dma.hbm_to_vmem [thread:$0]  (!%p2738_p1), %s348_s2, 1024, %s350_s20, %s339_s19, %s2554_s18, %s2554_s18, %s2555_s24  }
  0x67   : > { %361 = sbr.rel (%p2665_p8) target bundleno = 1263 (0x4ef), region = 52  ;;  %s2764_s0 = sand.u32 (!%p2665_p8), 1, %s2522_s28  }
  0x68   : > { %s1716_s6 = sshll.u32 (!%p2665_p8), %s2764_s0, 6  ;;  %s364_s27 = scalar_lea.sflag (!%p2665_p8), [#allocation5], %s2764_s0 }
  0x69   : > { %s367_s10 = scalar_lea.vmem (!%p2665_p8), [#allocation4], %s1716_s6  ;;  %p2977_p9 = scmp.ne.s32.totalorder (!%p2665_p8), %s2962_s15, 0 }
  0x6c   : > { %2497 = dma.done.wait (%p2977_p9), %s364_s27, 1024  }
  0x6d   : > { %2499 = vsyncadd (%p2977_p9), %s364_s27, 4294966272  ;;  %s372_s8 = sand.u32 1, %s2646_s13   ;;  %s2773_s17 = scalar_lea.vmem [#allocation7], %s1716_s6 }
  0x6e   : > { %s373_s29 = scalar_lea.sflag [#allocation8], %s372_s8 }
  0x6f   : > { %2501 = dma.done.wait (%p2977_p9), %s373_s29, 1024  }
  0x70   : > { %2503 = vsyncadd (%p2977_p9), %s373_s29, 4294966272  ;;  %p2978_p8 = scmp.eq.s32.totalorder %s2646_s13, 0 }
  0x72   : > { %2505 = dma.done.wait (%p2978_p8), [#allocation8], 2048   ;;  %p2979_p1 = pmov %p2978_p8 }
  0x74   : > { %2507 = vsyncadd (%p2979_p1), [#allocation8], 4294965248  ;;  %p2980_p11 = pmov %p2979_p1 }
  0x75   : > { %p2981_p13 = pmov %p2979_p1 }
  0x76   : > { %2509 = dma.done.wait (%p2980_p11), [#allocation11], 4096  }
  0x77   : > { %2511 = vsyncadd (%p2981_p13), [#allocation11], 4294963200  ;;  %s1721_s16 = sshll.u32 %s2764_s0, 3  ;;  %v2788_v0 = vld [vmem:[%s367_s10] sm:$0xf]  ;;  %p1722_p10 = scmp.ne.s32.totalorder %s2530_s30, 0 }
  0x78   : > { %v2790_v1 = vld [vmem:[%s367_s10 + $0x4] sm:$0xf]  ;;  %v2792_v2 = vld [vmem:[%s367_s10 + $0x8] sm:$0xf]  ;;  %v2794_v3 = vld [vmem:[%s367_s10 + $0xc] sm:$0xf] }
  0x79   : > { %v2796_v4 = vld [vmem:[%s367_s10 + $0x10] sm:$0xf]  ;;  %v2798_v5 = vld [vmem:[%s367_s10 + $0x14] sm:$0xf]  ;;  %v2800_v6 = vld [vmem:[%s367_s10 + $0x18] sm:$0xf] }
  0x7a   : > { %v2802_v7 = vld [vmem:[%s367_s10 + $0x1c] sm:$0xf]  ;;  %v2804_v8 = vld [vmem:[%s367_s10 + $0x20] sm:$0xf]  ;;  %v2806_v9 = vld [vmem:[%s367_s10 + $0x24] sm:$0xf] }
  0x7b   : > { %v2808_v10 = vld [vmem:[%s367_s10 + $0x28] sm:$0xf]  ;;  %v2810_v11 = vld [vmem:[%s367_s10 + $0x2c] sm:$0xf]  ;;  %v2812_v12 = vld [vmem:[%s367_s10 + $0x30] sm:$0xf] }
  0x7c   : > { %v2814_v13 = vld [vmem:[%s367_s10 + $0x34] sm:$0xf]  ;;  %v2816_v14 = vld [vmem:[%s367_s10 + $0x38] sm:$0xf]  ;;  %v2818_v15 = vld [vmem:[%s367_s10 + $0x3c] sm:$0xf] }
  0x7d   : > { %s2820_s13 = scalar_lea.vmem [#allocation13], %s1721_s16  ;;  %451 = sbr.rel (%p1722_p10) target bundleno = 592 (0x250), region = 76 }
  0x82   : > { %v2288_v16 = vld [vmem:[%s2773_s17 + $0x38] sm:$0xff]   ;;  %v1723_v17 = vcombine.low %v2788_v0, %v2790_v1  ;;  %v2289_v18 = vld [vmem:[%s2773_s17 + $0x30] sm:$0xff]   ;;  %v2290_v19 = vld [vmem:[%s2773_s17 + $0x28] sm:$0xff]   ;;  %v1724_v37 = vcombine.low %v2792_v2, %v2794_v3  ;;  %v1725_v39 = vcombine.low %v2796_v4, %v2798_v5  ;;  %v1726_v40 = vcombine.low %v2800_v6, %v2802_v7 }
  0x83   : > { %1957 = vmatprep.subr.bf16.mxu0 %v2288_v16  ;;  %v2291_v20 = vld [vmem:[%s2773_s17 + $0x20] sm:$0xff]   ;;  %v676_v21 = vld [vmem:[#allocation9 + $0x78] sm:$0xff]  ;;  %v675_v22 = vld [vmem:[#allocation9 + $0x70] sm:$0xff]  ;;  %v1727_v41 = vcombine.low %v2804_v8, %v2806_v9  ;;  %v1728_v42 = vcombine.low %v2808_v10, %v2810_v11  ;;  %v1729_v43 = vcombine.low %v2812_v12, %v2814_v13  ;;  %v1730_v44 = vcombine.low %v2816_v14, %v2818_v15 }
  0x84   : > { %1973 = vmatprep.mubr.bf16.mxu0 %v1723_v17  ;;  %1958 = vmatpush3.bf16.msra.mxu0 %v2288_v16  ;;  %v674_v23 = vld [vmem:[#allocation9 + $0x68] sm:$0xff]  ;;  %v2292_v24 = vld [vmem:[%s2773_s17 + $0x18] sm:$0xff]   ;;  %v673_v25 = vld [vmem:[#allocation9 + $0x60] sm:$0xff] }
  0x85   : > { %1959 = vmatprep.subr.bf16.mxu0 %v2289_v18  ;;  %1989 = vmatprep.subr.mxu1 %v676_v21  ;;  %v672_v26 = vld [vmem:[#allocation9 + $0x58] sm:$0xff]  ;;  %v2293_v27 = vld [vmem:[%s2773_s17 + $0x10] sm:$0xff]   ;;  %v670_v29 = vld [vmem:[#allocation9 + $0x48] sm:$0xff] }
  0x86   : > { %1990 = vmatpush3.msra.mxu1 %v676_v21  ;;  %v671_v28 = vld [vmem:[#allocation9 + $0x50] sm:$0xff]  ;;  %v2294_v30 = vld [vmem:[%s2773_s17 + $0x8] sm:$0xff]   ;;  %v669_v31 = vld [vmem:[#allocation9 + $0x40] sm:$0xff] }
  0x87   : > { %1991 = vmatprep.subr.mxu1 %v675_v22  ;;  %v668_v32 = vld [vmem:[#allocation9 + $0x38] sm:$0xff]  ;;  %v2295_v33 = vld [vmem:[%s2773_s17] sm:$0xff]   ;;  %v667_v34 = vld [vmem:[#allocation9 + $0x30] sm:$0xff] }
  0x88   : > { %1960 = vmatpush3.bf16.msra.mxu0 %v2289_v18  ;;  %1992 = vmatpush3.msra.mxu1 %v675_v22  ;;  %v666_v35 = vld [vmem:[#allocation9 + $0x28] sm:$0xff]  ;;  %v665_v36 = vld [vmem:[#allocation9 + $0x20] sm:$0xff]  ;;  %v664_v38 = vld [vmem:[#allocation9 + $0x18] sm:$0xff] }
  0x89   : > { %1961 = vmatprep.subr.bf16.mxu0 %v2290_v19  ;;  %1993 = vmatprep.subr.mxu1 %v674_v23  ;;  %v663_v45 = vld [vmem:[#allocation9 + $0x10] sm:$0xff]  ;;  %v662_v46 = vld [vmem:[#allocation9 + $0x8] sm:$0xff]  ;;  %v661_v47 = vld [vmem:[#allocation9] sm:$0xff] }
  0x8a   : > { %1994 = vmatpush3.msra.mxu1 %v674_v23  ;;  %v1739_v16 = vld [vmem:[%s2940_s3] ss:$0 sm:$0xff] }
  0x8b   : > { %1995 = vmatprep.subr.mxu1 %v673_v25 }
  0x8c   : > { %1962 = vmatpush3.bf16.msra.mxu0 %v2290_v19  ;;  %1996 = vmatpush3.msra.mxu1 %v673_v25 }
  0x8d   : > { %1963 = vmatprep.subr.bf16.mxu0 %v2291_v20  ;;  %1997 = vmatprep.subr.mxu1 %v672_v26 }
  0x8e   : > { %1998 = vmatpush3.msra.mxu1 %v672_v26 }
  0x8f   : > { %1999 = vmatprep.subr.mxu1 %v671_v28 }
  0x90   : > { %1964 = vmatpush3.bf16.msra.mxu0 %v2291_v20  ;;  %2000 = vmatpush3.msra.mxu1 %v671_v28 }
  0x91   : > { %1965 = vmatprep.subr.bf16.mxu0 %v2292_v24  ;;  %2001 = vmatprep.subr.mxu1 %v670_v29 }
  0x92   : > { %2002 = vmatpush3.msra.mxu1 %v670_v29 }
  0x93   : > { %2003 = vmatprep.subr.mxu1 %v669_v31 }
  0x94   : > { %1966 = vmatpush3.bf16.msra.mxu0 %v2292_v24  ;;  %2004 = vmatpush3.msra.mxu1 %v669_v31 }
  0x95   : > { %1967 = vmatprep.subr.bf16.mxu0 %v2293_v27  ;;  %2005 = vmatprep.subr.mxu1 %v668_v32 }
  0x96   : > { %2006 = vmatpush3.msra.mxu1 %v668_v32 }
  0x97   : > { %2007 = vmatprep.subr.mxu1 %v667_v34 }
  0x98   : > { %1968 = vmatpush3.bf16.msra.mxu0 %v2293_v27  ;;  %2008 = vmatpush3.msra.mxu1 %v667_v34 }
  0x99   : > { %1969 = vmatprep.subr.bf16.mxu0 %v2294_v30  ;;  %2009 = vmatprep.subr.mxu1 %v666_v35 }
  0x9a   : > { %2010 = vmatpush3.msra.mxu1 %v666_v35 }
  0x9b   : > { %2011 = vmatprep.subr.mxu1 %v665_v36 }
  0x9c   : > { %1970 = vmatpush3.bf16.msra.mxu0 %v2294_v30  ;;  %2012 = vmatpush3.msra.mxu1 %v665_v36 }
  0x9d   : > { %1971 = vmatprep.subr.bf16.mxu0 %v2295_v33  ;;  %2013 = vmatprep.subr.mxu1 %v664_v38 }
  0x9e   : > { %2014 = vmatpush3.msra.mxu1 %v664_v38 }
  0x9f   : > { %2015 = vmatprep.subr.mxu1 %v663_v45 }
  0xa0   : > { %1972 = vmatpush3.bf16.msra.mxu0 %v2295_v33  ;;  %2016 = vmatpush3.msra.mxu1 %v663_v45 }
  0xa1   : > { %2017 = vmatprep.subr.mxu1 %v662_v46 }
  0xa2   : > { %2018 = vmatpush3.msra.mxu1 %v662_v46 }
  0xa3   : > { %1974 = vmatmul.mubr.bf16.vlgmr.msra.gmra.mxu0 %v1724_v37  ;;  %2019 = vmatprep.subr.mxu1 %v661_v47 }
  0xa4   : > { %1977 = vmatprep.mubr.bf16.mxu0 %v1725_v39  ;;  %2020 = vmatpush3.msra.mxu1 %v661_v47 }
  0xab   : > { %1978 = vmatmul.mubr.bf16.gmra.mxu0 %v1726_v40 }
  0xac   : > { %1981 = vmatprep.mubr.bf16.mxu0 %v1727_v41 }
  0xb3   : > { %1982 = vmatmul.mubr.bf16.gmra.mxu0 %v1728_v42 }
  0xb4   : > { %1985 = vmatprep.mubr.bf16.mxu0 %v1729_v43 }
  0xbb   : > { %1986 = vmatmul.mubr.bf16.gmra.mxu0 %v1730_v44 }
 0x163   : > { %v1975_v48 = vpop.f32.mrf.mxu0 }
 0x165   : > { %v598_v49 = vpop.f32.mrf.mxu0 }
 0x166   : > { %2021 = vmatprep.mubr.f32.mxu1 %v598_v49 }
 0x167   : > { %v1976_v50 = vpop.f32.mrf.mxu0 }
 0x169   : > { %v601_v51 = vpop.f32.mrf.mxu0 }
 0x16a   : > { %2022 = vmatmul.mubr.f32.vlgmr.msra.gmra.mxu1 %v601_v51 }
 0x16b   : > { %v1979_v52 = vpop.f32.mrf.mxu0  ;;  %2024 = vmatprep.mubr.f32.mxu1 %v1975_v48 }
 0x16d   : > { %v614_v53 = vpop.f32.mrf.mxu0 }
 0x16e   : > { %2025 = vmatmul.mubr.f32.gmra.mxu1 %v1976_v50 }
 0x16f   : > { %v1980_v54 = vpop.f32.mrf.mxu0  ;;  %2027 = vmatprep.mubr.f32.mxu1 %v614_v53 }
 0x171   : > { %v617_v55 = vpop.f32.mrf.mxu0 }
 0x172   : > { %2028 = vmatmul.mubr.f32.gmra.mxu1 %v617_v55 }
 0x173   : > { %v1983_v56 = vpop.f32.mrf.mxu0  ;;  %2030 = vmatprep.mubr.f32.mxu1 %v1979_v52 }
 0x175   : > { %v630_v57 = vpop.f32.mrf.mxu0 }
 0x176   : > { %2031 = vmatmul.mubr.f32.gmra.mxu1 %v1980_v54 }
 0x177   : > { %v1984_v58 = vpop.f32.mrf.mxu0  ;;  %2033 = vmatprep.mubr.f32.mxu1 %v630_v57 }
 0x179   : > { %v633_v59 = vpop.f32.mrf.mxu0 }
 0x17a   : > { %2034 = vmatmul.mubr.f32.gmra.mxu1 %v633_v59 }
 0x17b   : > { %v1987_v60 = vpop.f32.mrf.mxu0  ;;  %2036 = vmatprep.mubr.f32.mxu1 %v1983_v56 }
 0x17d   : > { %v646_v61 = vpop.f32.mrf.mxu0 }
 0x17e   : > { %2037 = vmatmul.mubr.f32.gmra.mxu1 %v1984_v58 }
 0x17f   : > { %v1988_v62 = vpop.f32.mrf.mxu0  ;;  %2039 = vmatprep.mubr.f32.mxu1 %v646_v61 }
 0x181   : > { %v649_v63 = vpop.f32.mrf.mxu0 }
 0x182   : > { %2040 = vmatmul.mubr.f32.gmra.mxu1 %v649_v63 }
 0x183   : > { %2042 = vmatprep.mubr.f32.mxu1 %v1987_v60 }
 0x186   : > { %2043 = vmatmul.mubr.f32.gmra.mxu1 %v1988_v62 }
 0x22a   : > { %v2023_v17 = vpop.f32.mrf.mxu1 }
 0x22b   : > { %v756_v18 = vadd.f32 %v2023_v17, %v1739_v16 }
 0x22c   : > { %v750_v19 = vpop.f32.mrf.mxu1 }
 0x22d   : > { %v751_v20 = vadd.f32 %v1739_v16, %v750_v19  ;;  %v830_v22 = vmax.f32 %v756_v18, 0.0 }
 0x22e   : > { %v2026_v21 = vpop.f32.mrf.mxu1 }
 0x22f   : > { %v829_v23 = vmax.f32 %v751_v20, 0.0  ;;  %v766_v24 = vadd.f32 %v2026_v21, %v1739_v16 }
 0x230   : > { %v760_v25 = vpop.f32.mrf.mxu1 }
 0x231   : > { %v1800_v26 = vpack.c.bf16 %v830_v22, %v829_v23  ;;  %v761_v27 = vadd.f32 %v1739_v16, %v760_v25  ;;  %v832_v29 = vmax.f32 %v766_v24, 0.0 }
 0x232   : > { %v2029_v28 = vpop.f32.mrf.mxu1 }
 0x233   : > { %1801 = vst [vmem:[#allocation2] sm:$0xff] %v1800_v26   ;;  %v831_v30 = vmax.f32 %v761_v27, 0.0  ;;  %v776_v31 = vadd.f32 %v2029_v28, %v1739_v16 }
 0x234   : > { %v770_v32 = vpop.f32.mrf.mxu1 }
 0x235   : > { %v1805_v33 = vpack.c.bf16 %v832_v29, %v831_v30  ;;  %v771_v34 = vadd.f32 %v1739_v16, %v770_v32  ;;  %v834_v36 = vmax.f32 %v776_v31, 0.0 }
 0x236   : > { %v2032_v35 = vpop.f32.mrf.mxu1 }
 0x237   : > { %1837 = vst [vmem:[#allocation2 + $0x8] sm:$0xff] %v1805_v33   ;;  %v833_v37 = vmax.f32 %v771_v34, 0.0  ;;  %v786_v38 = vadd.f32 %v2032_v35, %v1739_v16 }
 0x238   : > { %v780_v39 = vpop.f32.mrf.mxu1 }
 0x239   : > { %v1810_v40 = vpack.c.bf16 %v834_v36, %v833_v37  ;;  %v781_v41 = vadd.f32 %v1739_v16, %v780_v39  ;;  %v836_v43 = vmax.f32 %v786_v38, 0.0 }
 0x23a   : > { %v2035_v42 = vpop.f32.mrf.mxu1 }
 0x23b   : > { %1838 = vst [vmem:[#allocation2 + $0x10] sm:$0xff] %v1810_v40   ;;  %v835_v44 = vmax.f32 %v781_v41, 0.0  ;;  %v796_v45 = vadd.f32 %v2035_v42, %v1739_v16 }
 0x23c   : > { %v790_v46 = vpop.f32.mrf.mxu1 }
 0x23d   : > { %v1815_v47 = vpack.c.bf16 %v836_v43, %v835_v44  ;;  %v791_v48 = vadd.f32 %v1739_v16, %v790_v46  ;;  %v838_v50 = vmax.f32 %v796_v45, 0.0 }
 0x23e   : > { %v2038_v49 = vpop.f32.mrf.mxu1 }
 0x23f   : > { %1839 = vst [vmem:[#allocation2 + $0x18] sm:$0xff] %v1815_v47   ;;  %v837_v51 = vmax.f32 %v791_v48, 0.0  ;;  %v806_v52 = vadd.f32 %v2038_v49, %v1739_v16 }
 0x240   : > { %v800_v53 = vpop.f32.mrf.mxu1 }
 0x241   : > { %v1820_v54 = vpack.c.bf16 %v838_v50, %v837_v51  ;;  %v801_v55 = vadd.f32 %v1739_v16, %v800_v53  ;;  %v840_v57 = vmax.f32 %v806_v52, 0.0 }
 0x242   : > { %v2041_v56 = vpop.f32.mrf.mxu1 }
 0x243   : > { %1840 = vst [vmem:[#allocation2 + $0x20] sm:$0xff] %v1820_v54   ;;  %v839_v58 = vmax.f32 %v801_v55, 0.0  ;;  %v816_v59 = vadd.f32 %v2041_v56, %v1739_v16 }
 0x244   : > { %v810_v60 = vpop.f32.mrf.mxu1 }
 0x245   : > { %v1825_v61 = vpack.c.bf16 %v840_v57, %v839_v58  ;;  %v811_v62 = vadd.f32 %v1739_v16, %v810_v60  ;;  %v842_v17 = vmax.f32 %v816_v59, 0.0 }
 0x246   : > { %v2044_v63 = vpop.f32.mrf.mxu1 }
 0x247   : > { %1841 = vst [vmem:[#allocation2 + $0x28] sm:$0xff] %v1825_v61   ;;  %v841_v18 = vmax.f32 %v811_v62, 0.0  ;;  %v826_v19 = vadd.f32 %v2044_v63, %v1739_v16 }
 0x248   : > { %v820_v20 = vpop.f32.mrf.mxu1 }
 0x249   : > { %v1830_v21 = vpack.c.bf16 %v842_v17, %v841_v18  ;;  %v821_v22 = vadd.f32 %v1739_v16, %v820_v20  ;;  %v844_v23 = vmax.f32 %v826_v19, 0.0 }
 0x24b   : > { %1842 = vst [vmem:[#allocation2 + $0x30] sm:$0xff] %v1830_v21   ;;  %v843_v24 = vmax.f32 %v821_v22, 0.0 }
 0x24d   : > { %v1835_v25 = vpack.c.bf16 %v844_v23, %v843_v24 }
 0x24f   : > { %1843 = vst [vmem:[#allocation2 + $0x38] sm:$0xff] %v1835_v25  }
 0x250 PF: > { %p1756_p0 = scmp.ne.s32.totalorder %s2530_s30, 1 }
 0x252   : > { %930 = sbr.rel (%p1756_p0) target bundleno = 1240 (0x4d8), region = 80 }
 0x257   : > { %v2296_v26 = vld [vmem:[#allocation2 + $0x38] sm:$0xff]   ;;  %v1757_v27 = vcombine.low %v2788_v0, %v2790_v1  ;;  %v2297_v28 = vld [vmem:[#allocation2 + $0x30] sm:$0xff]   ;;  %v2298_v29 = vld [vmem:[#allocation2 + $0x28] sm:$0xff]   ;;  %v1758_v44 = vcombine.low %v2792_v2, %v2794_v3  ;;  %v1759_v46 = vcombine.low %v2796_v4, %v2798_v5  ;;  %v1760_v47 = vcombine.low %v2800_v6, %v2802_v7 }
 0x258   : > { %2045 = vmatprep.subr.bf16.mxu0 %v2296_v26  ;;  %v2299_v16 = vld [vmem:[#allocation2 + $0x20] sm:$0xff]   ;;  %v1160_v30 = vld [vmem:[#allocation10 + $0x78] sm:$0xff]  ;;  %v1159_v31 = vld [vmem:[#allocation10 + $0x70] sm:$0xff]  ;;  %v1761_v48 = vcombine.low %v2804_v8, %v2806_v9  ;;  %v1762_v2 = vcombine.low %v2808_v10, %v2810_v11  ;;  %v1763_v5 = vcombine.low %v2812_v12, %v2814_v13  ;;  %v1764_v6 = vcombine.low %v2816_v14, %v2818_v15 }
 0x259   : > { %2061 = vmatprep.mubr.bf16.mxu0 %v1757_v27  ;;  %2046 = vmatpush3.bf16.msra.mxu0 %v2296_v26  ;;  %v1158_v32 = vld [vmem:[#allocation10 + $0x68] sm:$0xff]  ;;  %v2300_v33 = vld [vmem:[#allocation2 + $0x18] sm:$0xff]   ;;  %v1157_v0 = vld [vmem:[#allocation10 + $0x60] sm:$0xff]  ;;  %v2557_v7 = vmov 0.0   ;;  %vm2558_vm0 = vmmov 0  }
 0x25a   : > { %2047 = vmatprep.subr.bf16.mxu0 %v2297_v28  ;;  %2077 = vmatprep.subr.mxu1 %v1160_v30  ;;  %v1156_v1 = vld [vmem:[#allocation10 + $0x58] sm:$0xff]  ;;  %v2301_v34 = vld [vmem:[#allocation2 + $0x10] sm:$0xff]   ;;  %v1154_v36 = vld [vmem:[#allocation10 + $0x48] sm:$0xff] }
 0x25b   : > { %2078 = vmatpush3.msra.mxu1 %v1160_v30  ;;  %v1155_v35 = vld [vmem:[#allocation10 + $0x50] sm:$0xff]  ;;  %v2302_v37 = vld [vmem:[#allocation2 + $0x8] sm:$0xff]   ;;  %v1153_v38 = vld [vmem:[#allocation10 + $0x40] sm:$0xff] }
 0x25c   : > { %2079 = vmatprep.subr.mxu1 %v1159_v31  ;;  %v1152_v39 = vld [vmem:[#allocation10 + $0x38] sm:$0xff]  ;;  %v2303_v40 = vld [vmem:[#allocation2] sm:$0xff]   ;;  %v1151_v41 = vld [vmem:[#allocation10 + $0x30] sm:$0xff] }
 0x25d   : > { %2048 = vmatpush3.bf16.msra.mxu0 %v2297_v28  ;;  %2080 = vmatpush3.msra.mxu1 %v1159_v31  ;;  %v1150_v42 = vld [vmem:[#allocation10 + $0x28] sm:$0xff]  ;;  %v1149_v43 = vld [vmem:[#allocation10 + $0x20] sm:$0xff]  ;;  %v1148_v45 = vld [vmem:[#allocation10 + $0x18] sm:$0xff] }
 0x25e   : > { %2049 = vmatprep.subr.bf16.mxu0 %v2298_v29  ;;  %2081 = vmatprep.subr.mxu1 %v1158_v32  ;;  %v1147_v3 = vld [vmem:[#allocation10 + $0x10] sm:$0xff]  ;;  %v1146_v4 = vld [vmem:[#allocation10 + $0x8] sm:$0xff]  ;;  %v1145_v49 = vld [vmem:[#allocation10] sm:$0xff] }
 0x25f   : > { %2082 = vmatpush3.msra.mxu1 %v1158_v32  ;;  %v1470_v8 = vld [vmem:[#allocation12 + $0x78] sm:$0xff]  ;;  %v1469_v9 = vld [vmem:[#allocation12 + $0x70] sm:$0xff]  ;;  %v1468_v10 = vld [vmem:[#allocation12 + $0x68] sm:$0xff] }
 0x260   : > { %2083 = vmatprep.subr.mxu1 %v1157_v0  ;;  %v1467_v11 = vld [vmem:[#allocation12 + $0x60] sm:$0xff]  ;;  %v1466_v12 = vld [vmem:[#allocation12 + $0x58] sm:$0xff]  ;;  %v1465_v13 = vld [vmem:[#allocation12 + $0x50] sm:$0xff] }
 0x261   : > { %2050 = vmatpush3.bf16.msra.mxu0 %v2298_v29  ;;  %2084 = vmatpush3.msra.mxu1 %v1157_v0  ;;  %v1464_v62 = vld [vmem:[#allocation12 + $0x48] sm:$0xff]  ;;  %v1463_v17 = vld [vmem:[#allocation12 + $0x40] sm:$0xff]  ;;  %v1462_v19 = vld [vmem:[#allocation12 + $0x38] sm:$0xff] }
 0x262   : > { %2051 = vmatprep.subr.bf16.mxu0 %v2299_v16  ;;  %2085 = vmatprep.subr.mxu1 %v1156_v1  ;;  %v1461_v20 = vld [vmem:[#allocation12 + $0x30] sm:$0xff]  ;;  %v1460_v21 = vld [vmem:[#allocation12 + $0x28] sm:$0xff]  ;;  %v1459_v22 = vld [vmem:[#allocation12 + $0x20] sm:$0xff] }
 0x263   : > { %2086 = vmatpush3.msra.mxu1 %v1156_v1  ;;  %v1458_v23 = vld [vmem:[#allocation12 + $0x18] sm:$0xff]  ;;  %v1457_v24 = vld [vmem:[#allocation12 + $0x10] sm:$0xff]  ;;  %v1456_v25 = vld [vmem:[#allocation12 + $0x8] sm:$0xff] }
 0x264   : > { %2087 = vmatprep.subr.mxu1 %v1155_v35  ;;  %v1455_v26 = vld [vmem:[#allocation12] sm:$0xff] }
 0x265   : > { %2052 = vmatpush3.bf16.msra.mxu0 %v2299_v16  ;;  %2088 = vmatpush3.msra.mxu1 %v1155_v35  ;;  %v1773_v27 = vld [vmem:[%s2942_s5] ss:$0 sm:$0xff] }
 0x266   : > { %2053 = vmatprep.subr.bf16.mxu0 %v2300_v33  ;;  %2089 = vmatprep.subr.mxu1 %v1154_v36 }
 0x267   : > { %2090 = vmatpush3.msra.mxu1 %v1154_v36 }
 0x268   : > { %2091 = vmatprep.subr.mxu1 %v1153_v38 }
 0x269   : > { %2054 = vmatpush3.bf16.msra.mxu0 %v2300_v33  ;;  %2092 = vmatpush3.msra.mxu1 %v1153_v38 }
 0x26a   : > { %2055 = vmatprep.subr.bf16.mxu0 %v2301_v34  ;;  %2093 = vmatprep.subr.mxu1 %v1152_v39 }
 0x26b   : > { %2094 = vmatpush3.msra.mxu1 %v1152_v39 }
 0x26c   : > { %2095 = vmatprep.subr.mxu1 %v1151_v41 }
 0x26d   : > { %2056 = vmatpush3.bf16.msra.mxu0 %v2301_v34  ;;  %2096 = vmatpush3.msra.mxu1 %v1151_v41 }
 0x26e   : > { %2057 = vmatprep.subr.bf16.mxu0 %v2302_v37  ;;  %2097 = vmatprep.subr.mxu1 %v1150_v42 }
 0x26f   : > { %2098 = vmatpush3.msra.mxu1 %v1150_v42 }
 0x270   : > { %2099 = vmatprep.subr.mxu1 %v1149_v43 }
 0x271   : > { %2058 = vmatpush3.bf16.msra.mxu0 %v2302_v37  ;;  %2100 = vmatpush3.msra.mxu1 %v1149_v43 }
 0x272   : > { %2059 = vmatprep.subr.bf16.mxu0 %v2303_v40  ;;  %2101 = vmatprep.subr.mxu1 %v1148_v45 }
 0x273   : > { %2102 = vmatpush3.msra.mxu1 %v1148_v45 }
 0x274   : > { %2103 = vmatprep.subr.mxu1 %v1147_v3 }
 0x275   : > { %2060 = vmatpush3.bf16.msra.mxu0 %v2303_v40  ;;  %2104 = vmatpush3.msra.mxu1 %v1147_v3 }
 0x276   : > { %2105 = vmatprep.subr.mxu1 %v1146_v4  ;;  %2133 = vmatprep.subr.mxu0 %v2557_v7 }
 0x277   : > { %2106 = vmatpush3.msra.mxu1 %v1146_v4 }
 0x278   : > { %2062 = vmatmul.mubr.bf16.vlgmr.msra.gmra.mxu0 %v1758_v44  ;;  %2107 = vmatprep.subr.mxu1 %v1145_v49 }
 0x279   : > { %2065 = vmatprep.mubr.bf16.mxu0 %v1759_v46  ;;  %2108 = vmatpush3.msra.mxu1 %v1145_v49 }
 0x27a   : > { %2134 = vmatpush3.msra.mxu0 %v1470_v8 }
 0x27b   : > { %2135 = vmatprep.subr.mxu0 %v2557_v7 }
 0x27c   : > { %2136 = vmatpush3.msra.mxu0 %v1469_v9 }
 0x27d   : > { %2137 = vmatprep.subr.mxu0 %v2557_v7 }
 0x27e   : > { %2138 = vmatpush3.msra.mxu0 %v1468_v10 }
 0x27f   : > { %2139 = vmatprep.subr.mxu0 %v2557_v7 }
 0x280   : > { %2066 = vmatmul.mubr.bf16.gmra.mxu0 %v1760_v47 }
 0x281   : > { %2069 = vmatprep.mubr.bf16.mxu0 %v1761_v48  ;;  %2140 = vmatpush3.msra.mxu0 %v1467_v11 }
 0x282   : > { %2141 = vmatprep.subr.mxu0 %v2557_v7 }
 0x283   : > { %2142 = vmatpush3.msra.mxu0 %v1466_v12 }
 0x284   : > { %2143 = vmatprep.subr.mxu0 %v2557_v7 }
 0x285   : > { %2144 = vmatpush3.msra.mxu0 %v1465_v13 }
 0x286   : > { %2145 = vmatprep.subr.mxu0 %v2557_v7 }
 0x287   : > { %2146 = vmatpush3.msra.mxu0 %v1464_v62 }
 0x288   : > { %2070 = vmatmul.mubr.bf16.gmra.mxu0 %v1762_v2  ;;  %2147 = vmatprep.subr.mxu0 %v2557_v7 }
 0x289   : > { %2073 = vmatprep.mubr.bf16.mxu0 %v1763_v5  ;;  %2148 = vmatpush3.msra.mxu0 %v1463_v17  ;;  %v1774_v5 = vld [vmem:[%s2944_s7] ss:$0 sm:$0xff] }
 0x28a   : > { %2149 = vmatprep.subr.mxu0 %v2557_v7 }
 0x28b   : > { %2150 = vmatpush3.msra.mxu0 %v1462_v19 }
 0x28c   : > { %2151 = vmatprep.subr.mxu0 %v2557_v7 }
 0x28d   : > { %2152 = vmatpush3.msra.mxu0 %v1461_v20 }
 0x28e   : > { %2153 = vmatprep.subr.mxu0 %v2557_v7 }
 0x28f   : > { %2154 = vmatpush3.msra.mxu0 %v1460_v21 }
 0x290   : > { %2074 = vmatmul.mubr.bf16.gmra.mxu0 %v1764_v6  ;;  %2155 = vmatprep.subr.mxu0 %v2557_v7 }
 0x291   : > { %2156 = vmatpush3.msra.mxu0 %v1459_v22  ;;  %2165 = vmatprep.mubr.msk.f32.mxu0 %vm2558_vm0, %v2557_v7 }
 0x292   : > { %2157 = vmatprep.subr.mxu0 %v2557_v7 }
 0x293   : > { %2158 = vmatpush3.msra.mxu0 %v1458_v23 }
 0x294   : > { %2159 = vmatprep.subr.mxu0 %v2557_v7 }
 0x295   : > { %2160 = vmatpush3.msra.mxu0 %v1457_v24 }
 0x296   : > { %2161 = vmatprep.subr.mxu0 %v2557_v7 }
 0x297   : > { %2162 = vmatpush3.msra.mxu0 %v1456_v25 }
 0x298   : > { %2163 = vmatprep.subr.mxu0 %v2557_v7 }
 0x299   : > { %2164 = vmatpush3.msra.mxu0 %v1455_v26 }
 0x338   : > { %v2063_v14 = vpop.f32.mrf.mxu0 }
 0x33a   : > { %v1082_v15 = vpop.f32.mrf.mxu0 }
 0x33b   : > { %2109 = vmatprep.mubr.f32.mxu1 %v1082_v15 }
 0x33c   : > { %v2064_v50 = vpop.f32.mrf.mxu0 }
 0x33e   : > { %v1085_v51 = vpop.f32.mrf.mxu0 }
 0x33f   : > { %2110 = vmatmul.mubr.f32.vlgmr.msra.gmra.mxu1 %v1085_v51 }
 0x340   : > { %2112 = vmatprep.mubr.f32.mxu1 %v2063_v14  ;;  %v2067_v52 = vpop.f32.mrf.mxu0 }
 0x342   : > { %v1098_v53 = vpop.f32.mrf.mxu0 }
 0x343   : > { %2113 = vmatmul.mubr.f32.gmra.mxu1 %v2064_v50 }
 0x344   : > { %v2068_v54 = vpop.f32.mrf.mxu0  ;;  %2115 = vmatprep.mubr.f32.mxu1 %v1098_v53 }
 0x346   : > { %v1101_v55 = vpop.f32.mrf.mxu0 }
 0x347   : > { %2116 = vmatmul.mubr.f32.gmra.mxu1 %v1101_v55 }
 0x348   : > { %v2071_v56 = vpop.f32.mrf.mxu0  ;;  %2118 = vmatprep.mubr.f32.mxu1 %v2067_v52 }
 0x34a   : > { %v1114_v57 = vpop.f32.mrf.mxu0 }
 0x34b   : > { %2119 = vmatmul.mubr.f32.gmra.mxu1 %v2068_v54 }
 0x34c   : > { %v2072_v58 = vpop.f32.mrf.mxu0  ;;  %2121 = vmatprep.mubr.f32.mxu1 %v1114_v57 }
 0x34e   : > { %v1117_v59 = vpop.f32.mrf.mxu0 }
 0x34f   : > { %2122 = vmatmul.mubr.f32.gmra.mxu1 %v1117_v59 }
 0x350   : > { %2124 = vmatprep.mubr.f32.mxu1 %v2071_v56  ;;  %v2075_v60 = vpop.f32.mrf.mxu0 }
 0x352   : > { %v1130_v61 = vpop.f32.mrf.mxu0 }
 0x353   : > { %2125 = vmatmul.mubr.f32.gmra.mxu1 %v2072_v58 }
 0x354   : > { %2127 = vmatprep.mubr.f32.mxu1 %v1130_v61  ;;  %v2076_v63 = vpop.f32.mrf.mxu0 }
 0x356   : > { %v1133_v18 = vpop.f32.mrf.mxu0 }
 0x357   : > { %2128 = vmatmul.mubr.f32.gmra.mxu1 %v1133_v18 }
 0x358   : > { %2130 = vmatprep.mubr.f32.mxu1 %v2075_v60 }
 0x35b   : > { %2131 = vmatmul.mubr.f32.gmra.mxu1 %v2076_v63 }
 0x3ff   : > { %v2111_v28 = vpop.f32.mrf.mxu1 }
 0x400   : > { %v1240_v29 = vadd.f32 %v2111_v28, %v1773_v27 }
 0x401   : > { %v1234_v16 = vpop.f32.mrf.mxu1 }
 0x402   : > { %v1235_v30 = vadd.f32 %v1773_v27, %v1234_v16  ;;  %v1314_v32 = vmax.f32 %v1240_v29, 0.0 }
 0x403   : > { %v2114_v31 = vpop.f32.mrf.mxu1 }
 0x404   : > { %v1313_v33 = vmax.f32 %v1235_v30, 0.0 }
 0x405   : > { %v1244_v0 = vpop.f32.mrf.mxu1 }
 0x406   : > { %v1439_v1 = vmax.f32 %v1313_v33, %v1314_v32 }
 0x407   : > { %v2117_v34 = vpop.f32.mrf.mxu1 }
 0x408   : > { %v1449_v35 = vrot.slane %v1439_v1, 4 }
 0x409   : > { %v1254_v36 = vpop.f32.mrf.mxu1 }
 0x40a   : > { %v1450_v37 = vmax.f32 %v1439_v1, %v1449_v35 }
 0x40b   : > { %v2120_v38 = vpop.f32.mrf.mxu1 }
 0x40c   : > { %v1451_v39 = vrot.slane %v1450_v37, 2 }
 0x40d   : > { %v1264_v40 = vpop.f32.mrf.mxu1 }
 0x40e   : > { %v1452_v41 = vmax.f32 %v1450_v37, %v1451_v39 }
 0x40f   : > { %v2123_v42 = vpop.f32.mrf.mxu1 }
 0x410   : > { %v1453_v43 = vrot.slane %v1452_v41, 1 }
 0x411   : > { %v1274_v44 = vpop.f32.mrf.mxu1 }
 0x412   : > { %v1454_v45 = vmax.f32 %v1452_v41, %v1453_v43 }
 0x413   : > { %v2126_v46 = vpop.f32.mrf.mxu1 }
 0x414   : > { %2166 = vmatmul.mubr.f32.vlgmr.msra.gmra.mxu0 %v1454_v45 }
 0x415   : > { %v1284_v47 = vpop.f32.mrf.mxu1 }
 0x417   : > { %v2129_v48 = vpop.f32.mrf.mxu1 }
 0x419   : > { %v1294_v2 = vpop.f32.mrf.mxu1 }
 0x41b   : > { %v2132_v3 = vpop.f32.mrf.mxu1 }
 0x41d   : > { %v1304_v4 = vpop.f32.mrf.mxu1 }
 0x4d4   : > { %v1544_v49 = vpop.f32.mrf.mxu0 }
 0x4d5   : > { %v1545_v6 = vadd.f32 %v1774_v5, %v1544_v49 }
 0x4d6   : > { %v2167_v7 = vpop.f32.mrf.mxu0 }
 0x4d7   : > { %1548 = vst [vmem:[%s2820_s13] sm:$0xff] %v1545_v6 }
 0x4d8 PF: > { %s1776_s18 = sshll.u32 %s2534_s9, 7  ;;  %s2982_s20 = sld [smem:[#allocation30_spill]] }
 0x4d9   : > { %s1563_s19 = sshll.u32 %s2820_s13, 4  ;;  %s1550_s4 = scalar_lea.sflag [#allocation6], %s2764_s0  ;;  %s1564_s19 = int_to_ptr.vmem [resolvable:$true] %s1563_s19 }
 0x4da   : > { %s2438_s6 = scalar_lea.vmem %s1564_s19, 128  ;;  %s2559_s27 = smov [#allocation13]  }
 0x4db   : > { %p2439_p5 = scmp.ne.s32.totalorder %s1564_s19, %s2438_s6  ;;  %s2442_s10 = sshll.u32 %s2559_s27, 4  ;;  %s2443_s10 = int_to_ptr.vmem [resolvable:$false] %s2442_s10 }
 0x4dc   : > { %s2444_s8 = scalar_lea.vmem %s2443_s10, 256  ;;  %p2445_p2 = scmp.lt.s32.totalorder %s1564_s19, %s2443_s10 }
 0x4dd   : > { %p2440_p7 = pnand %p2439_p5, %p2714_p3  ;;  %p2446_p4 = scmp.lt.s32.totalorder %s2444_s8, %s2438_s6 }
 0x4de   : > { %s1561_s14 = scalar_lea.hbm %s2982_s20, %s1776_s18 }
 0x4df   : > { %p2441_p12 = pneg %p2440_p7  ;;  %p2447_p6 = por %p2446_p4, %p2445_p2 }
 0x4e1   : > { %p2448_p9 = pnand %p2447_p6, %p2441_p12 }
 0x4e3   : > { %2451 = shalt.err (!%p2448_p9)
}
 0x4e4   : > { %s2452_s9 = scalar_lea.hbm %s1561_s14, 128  ;;  %s2456_s17 = scalar_lea.hbm %s2982_s20, 256 }
 0x4e5   : > { %p2453_p8 = scmp.ne.s32.totalorder %s1561_s14, %s2452_s9  ;;  %p2457_p13 = scmp.lt.s32.totalorder %s1561_s14, %s2982_s20 }
 0x4e6   : > { %p2458_p10 = scmp.lt.s32.totalorder %s2456_s17, %s2452_s9 }
 0x4e7   : > { %p2454_p1 = pnand %p2453_p8, %p2714_p3 }
 0x4e8   : > { %p2459_p0 = por %p2458_p10, %p2457_p13 }
 0x4e9   : > { %p2455_p11 = pneg %p2454_p1 }
 0x4eb   : > { %p2460_p5 = pnand %p2459_p0, %p2455_p11 }
 0x4ed   : > { %2463 = shalt.err (!%p2460_p5)
}
 0x4ee   : > { %2184 = dma.vmem_to_hbm [thread:$0]  (%p2714_p3), %s1564_s19, 128, %s1561_s14, %s1550_s4  }
 0x4ef PF: > { %s2983_s15 = sld [smem:[#allocation19_spill]]  ;;  %p2214_p7 = scmp.ge.s32.totalorder %s2546_s12, 2 }
 0x4f0   : > { %s2984_s22 = sld [smem:[#allocation22_spill]] }
 0x4f5   : > { %s1575_s30 = sand.u32 1, %s2983_s15  }
 0x4f6   : > { %p2985_p12 = scmp.ne.s32.totalorder %s2984_s22, 0  ;;  %s1576_s26 = scalar_lea.sflag [#allocation6], %s1575_s30 }
 0x4f8   : > { %p2204_p2 = pnand %p2214_p7, %p2985_p12 }
 0x4fa   : > { %p2205_p4 = pneg %p2204_p2 }
 0x4fc   : > { %2513 = dma.done.wait (%p2205_p4), %s1576_s26, 128  }
 0x4fd   : > { %2515 = vsyncadd (%p2205_p4), %s1576_s26, 4294967168  ;;  %s28_s12 = sadd.s32 1, %s2546_s12   ;;  %s2986_s25 = sld [smem:[#allocation20_spill]] }
 0x4fe   : > { %p25_p6 = scmp.ge.s32.totalorder %s28_s12, 6   ;;  %s2987_s29 = sld [smem:[#allocation25_spill]] }
 0x4ff   : > { %s2988_s30 = sld [smem:[#allocation21_spill]]  ;;  %s2991_s27 = smov %s2522_s28 }
 0x500   : > { %s2989_s10 = sld [smem:[#allocation23_spill]]  ;;  %s2993_s9 = smov %s2542_s11 }
 0x501   : > { %s2990_s23 = sld [smem:[#allocation24_spill]] }
 0x503   : > { %s2992_s28 = smov %s2986_s25  ;;  %27 = sbr.rel (!%p25_p6) target bundleno = 16 (0x10), region = 140 }
 0x507   : > { %s2994_s11 = smov %s2990_s23 }
 0x508   :  { %1581 = vsyncpa [#allocation5], 1 }
 0x509   :  { %1583 = vsyncpa [#allocation5 + $0x1], 1 }
 0x50a   :  { %1584 = vsyncpa [#allocation8], 1 }
 0x50b   :  { %1586 = vsyncpa [#allocation8 + $0x1], 1 }
 0x50c   :  { %1587 = vsyncpa [#allocation11], 1 }
 0x50d   :  { %1588 = vsyncpa [#allocation6], 1 }
 0x50e   :  { %1590 = vsyncpa [#allocation6 + $0x1], 1 }

</bundles_post_ra>
